<compile_context>
chip_gen: v7x
topology: tpu7x:2x2x1
jax: 0.10.0
libtpu: 0.0.40
codegen_flags: <defaults>
</compile_context>

<pallas_src>
import jax
import jax.numpy as jnp
from jax.experimental import pallas as pl
from jax.experimental.pallas import tpu as pltpu


def _round_up(x, m):
    return (x + m - 1) // m * m


def critic_kernel(x_ref, w1_ref, b1_ref, w2_ref, b2_ref, w3_ref, b3_ref,
                  o_ref):
    # Layer 1: relu(x @ W1 + b1); MXU matmul with f32 accumulation,
    # bias-add / ReLU in f32 on the VPU (works on v5e too).
    h1 = jnp.dot(x_ref[...], w1_ref[...], preferred_element_type=jnp.float32)
    h1 = jnp.maximum(h1 + b1_ref[...], 0.0)

    # Layer 2: relu(h1 @ W2 + b2)
    h2 = jnp.dot(h1.astype(w2_ref.dtype), w2_ref[...],
                 preferred_element_type=jnp.float32)
    h2 = jnp.maximum(h2 + b2_ref[...], 0.0)

    # Layer 3 (H -> 1): VPU multiply + cross-lane reduce (an N=1 MXU matmul
    # would waste all but one result lane).  w3 is a (1, H) f32 row; b3 is an
    # SMEM scalar.  Result is stored lane-dense as one (1, 1, TB) row.
    q = jnp.sum(h2 * w3_ref[...], axis=-1) + b3_ref[0]          # (TB,)
    o_ref[...] = q.reshape(1, 1, -1).astype(o_ref.dtype)


def prepare_critic_params(params, compute_dtype=jnp.bfloat16):
    """One-time weight prep (cast/reshape), hoisted out of the per-step call.

    Call this once per optimizer update, not per forward.  Matmul operands
    (W1, W2) are cast to `compute_dtype` (bf16 default); biases, W3 and the
    head stay f32.
    """
    w1, b1, w2, b2, w3, b3 = params
    H = w1.shape[1]
    cdt = jnp.dtype(compute_dtype)
    return (
        w1.astype(cdt),                        # (S+A, H)
        b1.reshape(1, H).astype(jnp.float32),
        w2.astype(cdt),                        # (H, H)
        b2.reshape(1, H).astype(jnp.float32),
        w3.reshape(1, H).astype(jnp.float32),  # head runs on the VPU in f32
        b3.reshape(1).astype(jnp.float32),     # scalar bias -> SMEM
    )


def critic_forward(state, action, prepared_params, *, tile_batch=None):
    """state: [B, S], action: [B, A] -> Q: [B, 1] (float32).

    `prepared_params` must come from prepare_critic_params().
    """
    w1c, b1r, w2c, b2r, w3r, b3s = prepared_params
    B, S = state.shape
    A = action.shape[1]
    K = S + A
    H = w1c.shape[1]
    assert w1c.shape[0] == K
    cdt = w1c.dtype

    # Single pre-concatenated layer-1 operand: the concat of two narrow
    # arrays is a trivial one-off copy and is cheaper overall than a split
    # W1 (one MXU push chain, one DMA stream, half the lane-padded VMEM).
    x = jnp.concatenate([state.astype(cdt), action.astype(cdt)], axis=1)

    # Batch tiling.  sub = sublane pack (8 f32 / 16 bf16 rows).
    sub = 32 // jnp.dtype(cdt).itemsize
    if tile_batch is None:
        if B <= 1024:
            # >=2 grid steps so the "parallel" batch axis shards across both
            # of v7x's TensorCores; still only ~2 steps on v5e/v6e where
            # extra steps are pure per-step overhead.
            tile_batch = max(-(-B // 2), sub)
        else:
            tile_batch = 512   # sweep point; matches 1024 within noise
    tb = _round_up(tile_batch, sub)
    bp = _round_up(B, tb)
    if bp != B:
        x = jnp.pad(x, ((0, bp - B), (0, 0)))
    g = bp // tb

    def resident(arr):
        # Constant index_map -> fetched once, VMEM-resident across the grid.
        # For large H / fused twin critic on v7x, add
        # pipeline_mode=pl.Buffered(1) here to drop the redundant 2nd buffer.
        return pl.BlockSpec(arr.shape, lambda i: (0, 0),
                            memory_space=pltpu.VMEM)

    # Advisory cost so XLA can overlap this tiny call with surrounding work.
    flops = 2 * bp * (K * H + H * H + H)
    bytes_accessed = int(
        x.size * x.dtype.itemsize
        + sum(a.size * a.dtype.itemsize
              for a in (w1c, b1r, w2c, b2r, w3r, b3s))
        + bp * 4)

    out = pl.pallas_call(
        critic_kernel,
        out_shape=jax.ShapeDtypeStruct((g, 1, tb), jnp.float32),
        grid=(g,),
        in_specs=[
            pl.BlockSpec((tb, K), lambda i: (i, 0), memory_space=pltpu.VMEM),
            resident(w1c), resident(b1r),
            resident(w2c), resident(b2r),
            resident(w3r),
            pl.BlockSpec(memory_space=pltpu.SMEM),     # b3 scalar
        ],
        out_specs=pl.BlockSpec((1, 1, tb), lambda i: (i, 0, 0),
                               memory_space=pltpu.VMEM),
        compiler_params=pltpu.CompilerParams(
            dimension_semantics=("parallel",)),        # v7x: use both TCs
        cost_estimate=pl.CostEstimate(flops=flops, transcendentals=0,
                                      bytes_accessed=bytes_accessed),
    )(x, w1c, b1r, w2c, b2r, w3r, b3s)

    return out.reshape(bp, 1)[:B]


def xavier_uniform(key, fan_in, fan_out, dtype=jnp.float32):
    # matches torch.nn.init.xavier_uniform_ (gain=1)
    limit = float(jnp.sqrt(6.0 / (fan_in + fan_out)))
    return jax.random.uniform(key, (fan_in, fan_out), dtype, -limit, limit)


def init_critic_params(key, state_dim, action_dim, hidden_dim):
    # NOTE(perf): for real configs keep hidden_dim a multiple of 128 (the
    # PyTorch default of 256 already is) so vregs / MXU lanes stay full.
    in_dim = state_dim + action_dim
    k1, k2, k3 = jax.random.split(key, 3)
    w1 = xavier_uniform(k1, in_dim, hidden_dim)
    b1 = jnp.zeros((1, hidden_dim), jnp.float32)
    w2 = xavier_uniform(k2, hidden_dim, hidden_dim)
    b2 = jnp.zeros((1, hidden_dim), jnp.float32)
    w3 = xavier_uniform(k3, hidden_dim, 1)
    b3 = jnp.zeros((1, 1), jnp.float32)
    return (w1, b1, w2, b2, w3, b3)


if __name__ == "__main__":
    # Small, deterministic example shapes (batch not a tile multiple on
    # purpose, to exercise padding and a multi-step grid).
    batch, state_dim, action_dim, hidden_dim = 20, 12, 4, 32

    key = jax.random.PRNGKey(0)
    k_params, k_state, k_action = jax.random.split(key, 3)

    params = init_critic_params(k_params, state_dim, action_dim, hidden_dim)
    state = jax.random.normal(k_state, (batch, state_dim), jnp.float32)
    action = jax.random.normal(k_action, (batch, action_dim), jnp.float32)

    # Pure-JAX reference of the same math (f32 throughout).
    w1, b1, w2, b2, w3, b3 = params
    x = jnp.concatenate([state, action], axis=1)
    h1 = jnp.maximum(x @ w1 + b1, 0.0)
    h2 = jnp.maximum(h1 @ w2 + b2, 0.0)
    q_ref = h2 @ w3 + b3

    # Default path: bf16 matmuls / f32 accumulation, weight prep hoisted out
    # of the call, auto tile -> 2-step grid (batch padded 20 -> 32).
    prep_bf16 = prepare_critic_params(params)                 # bf16 default
    q_bf16 = jax.block_until_ready(critic_forward(state, action, prep_bf16))
    assert q_bf16.shape == (batch, 1)
    assert jnp.allclose(q_bf16, q_ref, atol=1e-1, rtol=1e-1)

    # f32 path, explicit small tiles -> grid=(3,), batch padded 20 -> 24.
    prep_f32 = prepare_critic_params(params, compute_dtype=jnp.float32)
    q_f32 = jax.block_until_ready(
        critic_forward(state, action, prep_f32, tile_batch=8))
    assert jnp.allclose(q_f32, q_ref, atol=1e-4, rtol=1e-4)

    # f32 path, auto tile size (2-step grid, padded 20 -> 32).
    q_f32_auto = jax.block_until_ready(critic_forward(state, action, prep_f32))
    assert jnp.allclose(q_f32_auto, q_ref, atol=1e-4, rtol=1e-4)

    print("KERNEL_OK")
</pallas_src>

<mosaic_0001>
module attributes {stable_mosaic.version = 11 : i64} {
  func.func @critic_kernel(%arg0: i32, %arg1: memref<16x16xbf16, #tpu.memory_space<vmem>>, %arg2: memref<16x32xbf16, #tpu.memory_space<vmem>>, %arg3: memref<1x32xf32, #tpu.memory_space<vmem>>, %arg4: memref<32x32xbf16, #tpu.memory_space<vmem>>, %arg5: memref<1x32xf32, #tpu.memory_space<vmem>>, %arg6: memref<1x32xf32, #tpu.memory_space<vmem>>, %arg7: memref<1xf32, #tpu.memory_space<smem>>, %arg8: memref<1x1x16xf32, #tpu.memory_space<vmem>>) attributes {dimension_semantics = [#tpu.dimension_semantics<parallel>], iteration_bounds = array<i64: 2>, scalar_prefetch = 0 : i64, scratch_operands = 0 : i64, tpu.core_type = #tpu.core_type<tc>, window_params = [{transform_indices = @transform_0, window_bounds = array<i64: 16, 16>}, {pipeline_mode = #tpu.pipeline_mode<synchronous>, transform_indices = @transform_1, window_bounds = array<i64: 16, 32>}, {pipeline_mode = #tpu.pipeline_mode<synchronous>, transform_indices = @transform_2, window_bounds = array<i64: 1, 32>}, {pipeline_mode = #tpu.pipeline_mode<synchronous>, transform_indices = @transform_3, window_bounds = array<i64: 32, 32>}, {pipeline_mode = #tpu.pipeline_mode<synchronous>, transform_indices = @transform_4, window_bounds = array<i64: 1, 32>}, {pipeline_mode = #tpu.pipeline_mode<synchronous>, transform_indices = @transform_5, window_bounds = array<i64: 1, 32>}, {transform_indices = @transform_6, window_bounds = array<i64: 1>}, {transform_indices = @transform_7, window_bounds = array<i64: 1, 1, 16>}]} {
    %c0 = arith.constant 0 : index
    %c0_0 = arith.constant 0 : index
    %0 = vector.load %arg1[%c0, %c0_0] : memref<16x16xbf16, #tpu.memory_space<vmem>>, vector<16x16xbf16>
    %c0_1 = arith.constant 0 : index
    %c0_2 = arith.constant 0 : index
    %1 = vector.load %arg2[%c0_1, %c0_2] : memref<16x32xbf16, #tpu.memory_space<vmem>>, vector<16x32xbf16>
    %cst = arith.constant dense<0.000000e+00> : vector<16x32xf32>
    %2 = tpu.matmul %0, %1, %cst {dimension_numbers = #tpu.dot_dimension_numbers<[1], [0], [0], [1], [0, 0, 1, 1], [], []>} : vector<16x16xbf16>, vector<16x32xbf16>, vector<16x32xf32> -> vector<16x32xf32>
    %c0_3 = arith.constant 0 : index
    %c0_4 = arith.constant 0 : index
    %3 = vector.load %arg3[%c0_3, %c0_4] : memref<1x32xf32, #tpu.memory_space<vmem>>, vector<1x32xf32>
    %4 = vector.broadcast %3 : vector<1x32xf32> to vector<16x32xf32>
    %5 = arith.addf %2, %4 : vector<16x32xf32>
    %cst_5 = arith.constant 0.000000e+00 : f32
    %6 = vector.broadcast %cst_5 : f32 to vector<16x32xf32>
    %7 = arith.maximumf %5, %6 : vector<16x32xf32>
    %8 = arith.truncf %7 : vector<16x32xf32> to vector<16x32xbf16>
    %c0_6 = arith.constant 0 : index
    %c0_7 = arith.constant 0 : index
    %9 = vector.load %arg4[%c0_6, %c0_7] : memref<32x32xbf16, #tpu.memory_space<vmem>>, vector<32x32xbf16>
    %cst_8 = arith.constant dense<0.000000e+00> : vector<16x32xf32>
    %10 = tpu.matmul %8, %9, %cst_8 {dimension_numbers = #tpu.dot_dimension_numbers<[1], [0], [0], [1], [0, 0, 1, 1], [], []>} : vector<16x32xbf16>, vector<32x32xbf16>, vector<16x32xf32> -> vector<16x32xf32>
    %c0_9 = arith.constant 0 : index
    %c0_10 = arith.constant 0 : index
    %11 = vector.load %arg5[%c0_9, %c0_10] : memref<1x32xf32, #tpu.memory_space<vmem>>, vector<1x32xf32>
    %12 = vector.broadcast %11 : vector<1x32xf32> to vector<16x32xf32>
    %13 = arith.addf %10, %12 : vector<16x32xf32>
    %cst_11 = arith.constant 0.000000e+00 : f32
    %14 = vector.broadcast %cst_11 : f32 to vector<16x32xf32>
    %15 = arith.maximumf %13, %14 : vector<16x32xf32>
    %c0_12 = arith.constant 0 : index
    %c0_13 = arith.constant 0 : index
    %16 = vector.load %arg6[%c0_12, %c0_13] : memref<1x32xf32, #tpu.memory_space<vmem>>, vector<1x32xf32>
    %17 = vector.broadcast %16 : vector<1x32xf32> to vector<16x32xf32>
    %18 = arith.mulf %15, %17 : vector<16x32xf32>
    %cst_14 = arith.constant dense<0.000000e+00> : vector<16xf32>
    %19 = vector.multi_reduction <add>, %18, %cst_14 [1] : vector<16x32xf32> to vector<16xf32>
    %c0_15 = arith.constant 0 : index
    %20 = memref.load %arg7[%c0_15] : memref<1xf32, #tpu.memory_space<smem>>
    %21 = vector.broadcast %20 : f32 to vector<16xf32>
    %22 = arith.addf %19, %21 : vector<16xf32>
    %23 = vector.shape_cast %22 : vector<16xf32> to vector<1x1x16xf32>
    %c0_16 = arith.constant 0 : index
    %c0_17 = arith.constant 0 : index
    %c0_18 = arith.constant 0 : index
    %24 = vector.load %arg8[%c0_16, %c0_17, %c0_18] : memref<1x1x16xf32, #tpu.memory_space<vmem>>, vector<1x1x16xf32>
    tpu.vector_store %arg8[%c0_16, %c0_17, %c0_18], %23 {strides = array<i32>} : memref<1x1x16xf32, #tpu.memory_space<vmem>>, vector<1x1x16xf32>,
    return
  }
  func.func @transform_0(%arg0: i32) -> (i32, i32) {
    %c0_i32 = arith.constant 0 : i32
    %c0_i32_0 = arith.constant 0 : i32
    return %arg0, %c0_i32 : i32, i32
  }
  func.func @transform_1(%arg0: i32) -> (i32, i32) {
    %c0_i32 = arith.constant 0 : i32
    %c0_i32_0 = arith.constant 0 : i32
    %c0_i32_1 = arith.constant 0 : i32
    return %c0_i32, %c0_i32_0 : i32, i32
  }
  func.func @transform_2(%arg0: i32) -> (i32, i32) {
    %c0_i32 = arith.constant 0 : i32
    %c0_i32_0 = arith.constant 0 : i32
    %c0_i32_1 = arith.constant 0 : i32
    return %c0_i32, %c0_i32_0 : i32, i32
  }
  func.func @transform_3(%arg0: i32) -> (i32, i32) {
    %c0_i32 = arith.constant 0 : i32
    %c0_i32_0 = arith.constant 0 : i32
    %c0_i32_1 = arith.constant 0 : i32
    return %c0_i32, %c0_i32_0 : i32, i32
  }
  func.func @transform_4(%arg0: i32) -> (i32, i32) {
    %c0_i32 = arith.constant 0 : i32
    %c0_i32_0 = arith.constant 0 : i32
    %c0_i32_1 = arith.constant 0 : i32
    return %c0_i32, %c0_i32_0 : i32, i32
  }
  func.func @transform_5(%arg0: i32) -> (i32, i32) {
    %c0_i32 = arith.constant 0 : i32
    %c0_i32_0 = arith.constant 0 : i32
    %c0_i32_1 = arith.constant 0 : i32
    return %c0_i32, %c0_i32_0 : i32, i32
  }
  func.func @transform_6(%arg0: i32) -> i32 {
    %c0_i32 = arith.constant 0 : i32
    %c0_i32_0 = arith.constant 0 : i32
    return %c0_i32 : i32
  }
  func.func @transform_7(%arg0: i32) -> (i32, i32, i32) {
    %c0_i32 = arith.constant 0 : i32
    %c0_i32_0 = arith.constant 0 : i32
    %c0_i32_1 = arith.constant 0 : i32
    return %arg0, %c0_i32, %c0_i32_0 : i32, i32, i32
  }
}

</mosaic_0001>

<bundles_post_ra>
// kernel: tpu_custom_call.1
= control target key start
LH: loop header
LB: loop body
LE: loop exit
PB: predicated region body
PF: predicated region fallthrough
CT: control target
= control target key end

     0   :  { %s837_s0 = inlined_call_operand.vmem [shape: bf16[32,16], index: 0, kind: input, shape index: {}]   ;;  %s838_s1 = inlined_call_operand.vmem [shape: bf16[16,32], index: 1, kind: input, shape index: {}]   ;;  %s839_s2 = inlined_call_operand.vmem [shape: f32[1,32], index: 2, kind: input, shape index: {}]   ;;  %s840_s3 = inlined_call_operand.vmem [shape: bf16[32,32], index: 3, kind: input, shape index: {}]   ;;  %s841_s4 = inlined_call_operand.vmem [shape: f32[1,32], index: 4, kind: input, shape index: {}]   ;;  %s842_s5 = inlined_call_operand.vmem [shape: f32[1,32], index: 5, kind: input, shape index: {}]   ;;  %s843_s6 = inlined_call_operand.<no memory space> [shape: f32[1], index: 6, kind: input, shape index: {}]   ;;  %s844_s7 = inlined_call_operand.hbm [shape: f32[2,1,16], index: 7, kind: output, shape index: {}]  }
   0x1   :  { %12 = sst [smem:[#allocation2]] %s843_s6 }
   0x2   :  { %13 = vsyncpa [#allocation4], 0 }
   0x3   :  { %15 = vsyncpa [#allocation4 + $0x1], 0  ;;  %s717_s26 = smov 0   ;;  %s719_s27 = smov 0  }
   0x4   :  { %s721_s28 = smov 0   ;;  %s723_s29 = smov 0  }
   0x5 LB: > { %s738_s6 = sadd.s32 4294967295, %s669_s29   ;;  %s525_s30 = sadd.s32 4294967294, %s669_s29   ;;  %s669_s29 = sphi %s723_s29, %s850_s29   ;;  %s665_s28 = sphi %s721_s28, %s849_s28   ;;  %s661_s27 = sphi %s719_s27, %s848_s27   ;;  %s657_s26 = sphi %s717_s26, %s847_s26  }
   0x6   : > { %s742_s8 = sadd.s32 1, %s669_s29   ;;  %s180_s9 = sadd.s32 1, %s665_s28 }
   0x7   : > { %s177_s10 = ssub.s32 %s669_s29, %s742_s8  ;;  %p190_p0 = scmp.ne.s32.totalorder %s665_s28, %s661_s27 }
   0x8   : > { %p178_p1 = scmp.eq.s32.totalorder %s177_s10, 0  ;;  %p191_p2 = scmp.eq.s32.totalorder %s738_s6, 1 }
   0x9   : > { %p196_p3 = scmp.ne.s32.totalorder %s661_s27, %s657_s26  ;;  %p197_p4 = scmp.eq.s32.totalorder %s525_s30, 1 }
   0xa   : > { %s753_s11 = scalar_select %p178_p1, %s665_s28, %s180_s9  }
   0xb   : > { %p755_p5 = por %p191_p2, %p190_p0  ;;  %p759_p6 = por %p197_p4, %p196_p3 }
   0xc   : > { %p528_p7 = scmp.ge.s32.totalorder %s669_s29, 1  ;;  %p242_p8 = scmp.lt.s32.totalorder %s669_s29, 3 }
   0xe   : > { %p243_p9 = pnand %p528_p7, %p242_p8 }
   0xf   : > { %v603_v0 = vld [vmem:[%s838_s1] sm:$0xff] (!%p243_p9)   ;;  %v671_v1 = vmov (!%p243_p9), 0.0   ;;  %s529_s16 = sshll.u32 (!%p243_p9), %s738_s6, 1  ;;  %vm672_vm0 = vmmov (!%p243_p9), 0   ;;  %vm302_vm1 = vcmask (!%p243_p9), 130048   ;;  %v606_v4 = vld [vmem:[%s840_s3 + $0x8] sm:$0xff] (!%p243_p9)   ;;  %v441_v29 = vlaneseq (!%p243_p9) }
  0x10   : > { %246 = sbr.rel (%p243_p9) target bundleno = 631 (0x277), region = 48  ;;  %548 = vmatprep.subr.bf16.mxu0 (!%p243_p9), %v671_v1  ;;  %554 = vmatprep.subr.bf16.mxu1 (!%p243_p9), %v671_v1  ;;  %p274_p10 = scmp.lt.s32.totalorder (!%p243_p9), %s529_s16, 3  ;;  %v605_v3 = vld [vmem:[%s840_s3] sm:$0xff] (!%p243_p9)   ;;  %vm373_vm2 = vcmask (!%p243_p9), 261120   ;;  %vm452_vm3 = vcmask (!%p243_p9), 130112   ;;  %vm455_vm4 = vcmask (!%p243_p9), 122880  }
  0x11   : > { %549 = vmatpush3.bf16.msra.mxu0 (!%p243_p9), %v603_v0  ;;  %550 = vmatprep.mubr.msk.bf16.mxu0 (!%p243_p9), %vm672_vm0, %v671_v1  ;;  %v531_v5 = vld [vmem:[%s839_s2] ss:$0 sm:$0xff] (!%p243_p9)  ;;  %v442_v30 = vand.u32 (!%p243_p9), 127, %v441_v29  ;;  %v444_v31 = vshrl.u32 (!%p243_p9), %v441_v29, 7  ;;  %s540_s18 = sshll.u32 (!%p243_p9), %s738_s6, 4  ;;  %s673_s25 = smov (!%p243_p9), [#allocation3]  }
  0x12   : > { %558 = vmatprep.mubr.msk.bf16.mxu1 (!%p243_p9), %vm672_vm0, %v671_v1  ;;  %555 = vmatpush3.bf16.msra.mxu1 (!%p243_p9), %v605_v3  ;;  %v535_v15 = vld [vmem:[%s841_s4] ss:$0 sm:$0xff] (!%p243_p9)  ;;  %s795_s23 = scalar_lea.hbm (!%p243_p9), %s844_s7, %s540_s18  ;;  %s611_s30 = sshll.u32 (!%p243_p9), %s673_s25, 4  ;;  %s612_s30 = int_to_ptr.vmem [resolvable:$false] %s611_s30 }
  0x13   : > { %556 = vmatprep.subr.bf16.mxu1 (!%p243_p9), %v671_v1  ;;  %v539_v20 = vld [vmem:[%s842_s5] ss:$0 sm:$0xff] (!%p243_p9)  ;;  %v447_v32 = vadd.s32 (!%p243_p9), 4294967288, %v442_v30  ;;  %v445_v35 = vsub.s32 (!%p243_p9), %v442_v30, %v444_v31  ;;  %s613_s9 = scalar_lea.vmem (!%p243_p9), %s612_s30, 32 }
  0x15   : > { %v450_v37 = vsub.s32 (!%p243_p9), %v447_v32, %v444_v31 }
  0x16   : > { %557 = vmatpush3.bf16.msra.mxu1 (!%p243_p9), %v606_v4 }
  0x17   : > { %s852_s16 = smov (!%p274_p10, %s529_s16), 3 }
  0x18   : > { %s530_s17 = sshll.u32 %s852_s16, 2  ;;  %s435_s16 = sld [smem:[#allocation2]] }
  0x19   : > { %s277_s20 = scalar_lea.vmem %s837_s0, %s530_s17  ;;  %s271_s17 = sand.u32 1, %s661_s27  }
  0x1a   : > { %v604_v2 = vld [vmem:[%s277_s20] sm:$0xff]   ;;  %s272_s19 = scalar_lea.vmem [#allocation3], %s271_s17  ;;  %s458_s24 = scalar_lea.sflag [#allocation4], %s271_s17 }
  0x1b   : > { %551 = vmatmul.mubr.msk.bf16.vlgmr.msra.gmra.mrb[0].mxu0 %vm302_vm1, %v604_v2  ;;  %s470_s20 = sshll.u32 %s272_s19, 4  ;;  %s797_s20 = int_to_ptr.vmem [resolvable:$true] %s470_s20 }
  0x1c   : > { %s607_s6 = scalar_lea.vmem %s797_s20, 16  ;;  %p614_p0 = scmp.lt.s32.totalorder %s797_s20, %s612_s30 }
  0x1d   : > { %p608_p11 = scmp.ne.s32.totalorder %s797_s20, %s607_s6  ;;  %p615_p1 = scmp.lt.s32.totalorder %s613_s9, %s607_s6 }
  0x1e   : > { %v436_v33 = vstv %s435_s16 }
  0x1f   : > { %p609_p12 = pnand %p608_p11, %p755_p5  ;;  %p616_p2 = por %p615_p1, %p614_p0 }
  0x21   : > { %p610_p13 = pneg %p609_p12 }
  0x23   : > { %p617_p3 = pnand %p616_p2, %p610_p13 }
  0xee   : > { %v340_v6 = vpop.f32.mrb[0].mxu0 }
  0xef   : > { %v341_v7 = vadd.f32 %v531_v5, %v340_v6  ;;  %v552_v8 = vpop.f32.mrb[1].mxu0 }
  0xf0   : > { %v343_v9 = vpop.f32.mrb[2].mxu0 }
  0xf1   : > { %v344_v10 = vadd.f32 %v531_v5, %v343_v9  ;;  %v553_v11 = vpop.f32.mrb[3].mxu0  ;;  %v347_v12 = vmax.f32 %v341_v7, 0.0 }
  0xf3   : > { %v348_v13 = vmax.f32 %v344_v10, 0.0 }
  0xf5   : > { %v349_v14 = vpack.c.bf16 %v348_v13, %v347_v12 }
  0xf7   : > { %559 = vmatmul.mubr.msk.bf16.vlgmr.msra.gmra.mrb[0].mxu1 %vm373_vm2, %v349_v14 }
 0x1ca   : > { %v411_v16 = vpop.f32.mrb[0].mxu1 }
 0x1cb   : > { %v412_v17 = vadd.f32 %v535_v15, %v411_v16  ;;  %v560_v18 = vpop.f32.mrb[1].mxu1 }
 0x1cc   : > { %v414_v19 = vpop.f32.mrb[2].mxu1 }
 0x1cd   : > { %v418_v21 = vmax.f32 %v412_v17, 0.0  ;;  %v415_v22 = vadd.f32 %v535_v15, %v414_v19  ;;  %v561_v23 = vpop.f32.mrb[3].mxu1 }
 0x1cf   : > { %v419_v24 = vmax.f32 %v415_v22, 0.0  ;;  %v427_v25 = vmul.f32 %v539_v20, %v418_v21 }
 0x1d1   : > { %v429_v26 = vsel %vm373_vm2, %v427_v25, 0.0  ;;  %v428_v27 = vmul.f32 %v539_v20, %v419_v24 }
 0x1d2   : > { %430 = vadd.xlane.f32.xlu0 %v429_v26 }
 0x1d3   : > { %v432_v28 = vsel %vm373_vm2, %v428_v27, 0.0 }
 0x1d6   : > { %433 = vadd.xlane.f32.xlu0 %v432_v28 }
 0x25f   : > { %v431_v34 = vpop.xlane.xlu0 %430 }
 0x260   : > { %v437_v36 = vadd.f32 %v436_v33, %v431_v34 }
 0x262   : > { %v446_v40 = vrot.slane %v437_v36, %v445_v35 }
 0x263   : > { %v434_v38 = vpop.xlane.xlu0 %433 }
 0x264   : > { %v438_v39 = vadd.f32 %v436_v33, %v434_v38 }
 0x266   : > { %v451_v41 = vrot.slane %v438_v39, %v450_v37 }
 0x268   : > { %v453_v42 = vsel %vm452_vm3, %v451_v41, %v446_v40 }
 0x269   : > { %456 = vst.msk [vmem:[%s272_s19] sm:$0x1] %vm455_vm4, %v453_v42 }
 0x26a   : > { %620 = shalt.err (!%p617_p3)
}
 0x26b   : > { %s621_s10 = scalar_lea.hbm %s795_s23, 16  ;;  %s625_s16 = scalar_lea.hbm %s844_s7, 32 }
 0x26c   : > { %p622_p4 = scmp.ne.s32.totalorder %s795_s23, %s621_s10  ;;  %p626_p9 = scmp.lt.u32.totalorder %s795_s23, %s844_s7 }
 0x26d   : > { %p627_p10 = scmp.lt.u32.totalorder %s625_s16, %s621_s10  ;;  %p629_p12 = scmp.lt.u32.totalorder %s621_s10, %s795_s23 }
 0x26e   : > { %p623_p7 = pnand %p622_p4, %p755_p5 }
 0x26f   : > { %p628_p11 = por %p627_p10, %p626_p9 }
 0x270   : > { %p624_p8 = pneg %p623_p7 }
 0x271   : > { %p630_p13 = por %p629_p12, %p628_p11 }
 0x273   : > { %p631_p0 = pnand %p630_p13, %p624_p8 }
 0x275   : > { %634 = shalt.err (!%p631_p0)
}
 0x276   : > { %562 = dma.vmem_to_hbm [thread:$0]  (%p755_p5), %s797_s20, 16, %s795_s23, %s458_s24  }
 0x277 PF: > { %p568_p1 = scmp.ge.s32.totalorder %s669_s29, 2  ;;  %s482_s19 = sand.u32 1, %s657_s26  }
 0x278   : > { %s483_s21 = scalar_lea.sflag [#allocation4], %s482_s19 }
 0x279   : > { %p565_p2 = pnand %p568_p1, %p759_p6 }
 0x27b   : > { %652 = dma.done.wait (!%p565_p2), %s483_s21, 16  }
 0x27c   : > { %654 = vsyncadd (!%p565_p2), %s483_s21, 4294967280  ;;  %p18_p3 = scmp.ge.s32.totalorder %s742_s8, 4   ;;  %s847_s26 = smov %s661_s27 }
 0x27d   : > { %s848_s27 = smov %s665_s28  ;;  %s849_s28 = smov %s753_s11 }
 0x27e   : > { %s850_s29 = smov %s742_s8  ;;  %20 = sbr.rel (!%p18_p3) target bundleno = 5 (0x5), region = 83 }
 0x285   :  { %487 = vsyncpa [#allocation4], 1 }
 0x286   :  { %489 = vsyncpa [#allocation4 + $0x1], 1 }

</bundles_post_ra>
